<compile_context>
chip_gen: v6e
topology: v6e:2x2x1
jax: 0.10.0
libtpu: 0.0.40
codegen_flags: <defaults>
</compile_context>

<pallas_src>
import functools

import jax
import jax.numpy as jnp
from jax import lax
from jax.experimental import pallas as pl
from jax.experimental.pallas import tpu as pltpu

BN_EPS = 1e-5
ACT_DTYPE = jnp.bfloat16


def _round_up(x, m):
    return ((x + m - 1) // m) * m


# ---------------------------------------------------------------------------
# Core Pallas kernel: tiled matmul with fused BN scale/bias (+residual, +ReLU)
# ---------------------------------------------------------------------------
def _mm_bn_act_kernel(*refs, apply_relu, has_residual):
    if has_residual:
        x_ref, w_ref, s_ref, b_ref, r_ref, o_ref, acc_ref = refs
    else:
        x_ref, w_ref, s_ref, b_ref, o_ref, acc_ref = refs
        r_ref = None

    @pl.when(pl.program_id(2) == 0)
    def _():
        acc_ref[...] = jnp.zeros_like(acc_ref)

    acc_ref[...] += jnp.dot(x_ref[...], w_ref[...],
                            preferred_element_type=jnp.float32)

    @pl.when(pl.program_id(2) == pl.num_programs(2) - 1)
    def _():
        y = acc_ref[...] * s_ref[...] + b_ref[...]
        if r_ref is not None:
            y = y + r_ref[...].astype(jnp.float32)
        if apply_relu:
            y = jnp.maximum(y, 0.0)
        o_ref[...] = y.astype(o_ref.dtype)


def matmul_bn_act(x, w, scale, bias, residual=None, apply_relu=True,
                  out_dtype=ACT_DTYPE):
    """act((x @ w) * scale + bias [+ residual]) with bf16 inputs / f32 accum."""
    M, K = x.shape
    K2, N = w.shape
    assert K == K2
    assert scale.shape == (N,) and bias.shape == (N,)

    TM = 256
    K_pad = _round_up(K, 128)
    TK = 256 if K_pad % 256 == 0 else 128
    N_pad = _round_up(N, 128)
    TN = 256 if N_pad % 256 == 0 else 128
    M_pad = _round_up(M, TM)

    xp = jnp.pad(x.astype(ACT_DTYPE), ((0, M_pad - M), (0, K_pad - K)))
    wp = jnp.pad(w.astype(ACT_DTYPE), ((0, K_pad - K), (0, N_pad - N)))
    sp = jnp.pad(scale.astype(jnp.float32), (0, N_pad - N)).reshape(1, N_pad)
    bp = jnp.pad(bias.astype(jnp.float32), (0, N_pad - N)).reshape(1, N_pad)

    inputs = [xp, wp, sp, bp]
    in_specs = [
        pl.BlockSpec((TM, TK), lambda i, j, k: (i, k)),
        pl.BlockSpec((TK, TN), lambda i, j, k: (k, j)),
        pl.BlockSpec((1, TN), lambda i, j, k: (0, j)),
        pl.BlockSpec((1, TN), lambda i, j, k: (0, j)),
    ]
    has_res = residual is not None
    if has_res:
        assert residual.shape == (M, N)
        rp = jnp.pad(residual.astype(ACT_DTYPE),
                     ((0, M_pad - M), (0, N_pad - N)))
        inputs.append(rp)
        in_specs.append(pl.BlockSpec((TM, TN), lambda i, j, k: (i, j)))

    kernel = functools.partial(_mm_bn_act_kernel, apply_relu=apply_relu,
                               has_residual=has_res)

    out = pl.pallas_call(
        kernel,
        out_shape=jax.ShapeDtypeStruct((M_pad, N_pad), out_dtype),
        grid_spec=pltpu.PrefetchScalarGridSpec(
            num_scalar_prefetch=0,
            grid=(M_pad // TM, N_pad // TN, K_pad // TK),
            in_specs=in_specs,
            out_specs=pl.BlockSpec((TM, TN), lambda i, j, k: (i, j)),
            scratch_shapes=[pltpu.VMEM((TM, TN), jnp.float32)],
        ),
        compiler_params=pltpu.CompilerParams(
            dimension_semantics=("parallel", "parallel", "arbitrary")),
    )(*inputs)
    return out[:M, :N]


# ---------------------------------------------------------------------------
# Layer wrappers
# ---------------------------------------------------------------------------
def _fold_bn(gamma, beta, mean, var):
    scale = gamma / jnp.sqrt(var + BN_EPS)
    return scale, beta - mean * scale


def conv2d_bn_act(x, w, bn, *, stride, padding, apply_relu=True, residual=None):
    """NHWC conv as im2col + fused Pallas matmul. Output channels padded to 128."""
    B, H, W, Cin_x = x.shape
    Cout, Cin, kh, kw = w.shape
    assert Cin_x >= Cin
    Cout_pad = _round_up(Cout, 128)

    scale, bias = _fold_bn(*bn)
    scale = jnp.pad(scale, (0, Cout_pad - Cout))
    bias = jnp.pad(bias, (0, Cout_pad - Cout))

    # (Cout, Cin, kh, kw) -> (kh, kw, Cin, Cout); zero-pad Cin up to x's
    # (possibly zero-padded) channel count and Cout up to a 128-lane multiple.
    w_hwio = jnp.transpose(w, (2, 3, 1, 0))
    w_hwio = jnp.pad(w_hwio, ((0, 0), (0, 0),
                              (0, Cin_x - Cin), (0, Cout_pad - Cout)))

    Ho = (H + 2 * padding - kh) // stride + 1
    Wo = (W + 2 * padding - kw) // stride + 1
    xp = jnp.pad(x, ((0, 0), (padding, padding), (padding, padding), (0, 0)))
    cols = []
    for dy in range(kh):
        for dx in range(kw):
            cols.append(xp[:, dy:dy + (Ho - 1) * stride + 1:stride,
                           dx:dx + (Wo - 1) * stride + 1:stride, :])
    patches = jnp.concatenate(cols, axis=-1)          # (B, Ho, Wo, kh*kw*Cin_x)
    lhs = patches.reshape(B * Ho * Wo, kh * kw * Cin_x)
    rhs = w_hwio.reshape(kh * kw * Cin_x, Cout_pad)

    res2d = None
    if residual is not None:
        assert residual.shape == (B, Ho, Wo, Cout_pad)
        res2d = residual.reshape(B * Ho * Wo, Cout_pad)

    out = matmul_bn_act(lhs, rhs, scale, bias, residual=res2d,
                        apply_relu=apply_relu)
    return out.reshape(B, Ho, Wo, Cout_pad)


def maxpool_3x3_s2(x):
    # TODO(synk): MaxPool2d(3, stride=2, padding=1) stays as lax.reduce_window
    # in the wrapper (window max is data movement + compare, not ported to Pallas).
    return lax.reduce_window(x, jnp.array(-jnp.inf, x.dtype), lax.max,
                             (1, 3, 3, 1), (1, 2, 2, 1),
                             [(0, 0), (1, 1), (1, 1), (0, 0)])


def upsample_nearest(x_nchw, size):
    """PyTorch nn.Upsample(size, mode='nearest') on NCHW input."""
    B, C, H, W = x_nchw.shape
    Ho, Wo = size
    rows = (jnp.arange(Ho) * H) // Ho
    cols = (jnp.arange(Wo) * W) // Wo
    return x_nchw[:, :, rows, :][:, :, :, cols]


def basic_block(x, blk, stride):
    identity = x
    out = conv2d_bn_act(x, blk["conv1_w"], blk["bn1"], stride=stride, padding=1,
                        apply_relu=True)
    if "down_w" in blk:
        identity = conv2d_bn_act(x, blk["down_w"], blk["bn_d"], stride=stride,
                                 padding=0, apply_relu=False)
    return conv2d_bn_act(out, blk["conv2_w"], blk["bn2"], stride=1, padding=1,
                         apply_relu=True, residual=identity)


def avgpool_fc(x, fc_w, fc_b):
    B, H, W, C = x.shape
    S = H * W
    xr = x.reshape(B * S, C)
    # Global average pool on the MXU: block-diagonal ones selector matmul,
    # with 1/S folded into the f32 epilogue scale.
    sel = jnp.kron(jnp.eye(B, dtype=ACT_DTYPE), jnp.ones((1, S), ACT_DTYPE))
    pooled = matmul_bn_act(sel, xr,
                           scale=jnp.full((C,), 1.0 / S, jnp.float32),
                           bias=jnp.zeros((C,), jnp.float32),
                           apply_relu=False, out_dtype=jnp.float32)
    # fc: 512 -> 10 (output lanes padded to 128 inside matmul_bn_act, sliced back).
    nc = fc_w.shape[0]
    return matmul_bn_act(pooled, fc_w.T,
                         scale=jnp.ones((nc,), jnp.float32),
                         bias=fc_b.astype(jnp.float32),
                         apply_relu=False, out_dtype=jnp.float32)


def cifar10_resnet_forward(x_nchw, params):
    """x: (B, 3, H, W) NCHW float32. Returns logits (B, 10) float32."""
    # nn.Upsample((160, 160), mode='nearest') + nn.ZeroPad2d(32) -> 224x224.
    x = upsample_nearest(x_nchw, (160, 160))
    x = jnp.pad(x, ((0, 0), (0, 0), (32, 32), (32, 32)))
    x = jnp.transpose(x, (0, 2, 3, 1)).astype(ACT_DTYPE)      # NHWC, bf16
    # ResNet-18 stem.
    x = conv2d_bn_act(x, params["conv1_w"], params["bn1"], stride=2, padding=3)
    x = maxpool_3x3_s2(x)
    # Four stages of two BasicBlocks each.
    for blocks, stride in params["layers"]:
        for bi, blk in enumerate(blocks):
            x = basic_block(x, blk, stride if bi == 0 else 1)
    return avgpool_fc(x, params["fc_w"], params["fc_b"])


# ---------------------------------------------------------------------------
# Plain-JAX (XLA) reference with the same bf16/f32 cast structure.
# ---------------------------------------------------------------------------
def _ref_conv_bn(x, w, bn, *, stride, padding, relu, residual=None):
    scale, bias = _fold_bn(*bn)
    y = lax.conv_general_dilated(
        x.astype(ACT_DTYPE), jnp.transpose(w, (2, 3, 1, 0)).astype(ACT_DTYPE),
        window_strides=(stride, stride),
        padding=[(padding, padding), (padding, padding)],
        dimension_numbers=("NHWC", "HWIO", "NHWC"),
        preferred_element_type=jnp.float32)
    y = y * scale + bias
    if residual is not None:
        y = y + residual.astype(jnp.float32)
    if relu:
        y = jnp.maximum(y, 0.0)
    return y.astype(ACT_DTYPE)


def reference_forward(x_nchw, params):
    x = upsample_nearest(x_nchw, (160, 160))
    x = jnp.pad(x, ((0, 0), (0, 0), (32, 32), (32, 32)))
    x = jnp.transpose(x, (0, 2, 3, 1)).astype(ACT_DTYPE)
    x = _ref_conv_bn(x, params["conv1_w"], params["bn1"], stride=2, padding=3,
                     relu=True)
    x = maxpool_3x3_s2(x)
    for blocks, stride in params["layers"]:
        for bi, blk in enumerate(blocks):
            s = stride if bi == 0 else 1
            identity = x
            h = _ref_conv_bn(x, blk["conv1_w"], blk["bn1"], stride=s, padding=1,
                             relu=True)
            if "down_w" in blk:
                identity = _ref_conv_bn(x, blk["down_w"], blk["bn_d"], stride=s,
                                        padding=0, relu=False)
            x = _ref_conv_bn(h, blk["conv2_w"], blk["bn2"], stride=1, padding=1,
                             relu=True, residual=identity)
    pooled = jnp.sum(x.astype(jnp.float32), axis=(1, 2)) / (x.shape[1] * x.shape[2])
    logits = jnp.dot(pooled.astype(ACT_DTYPE),
                     params["fc_w"].T.astype(ACT_DTYPE),
                     preferred_element_type=jnp.float32) + params["fc_b"]
    return logits


# ---------------------------------------------------------------------------
# Parameter init (ResNet-18 topology, deterministic random weights)
# ---------------------------------------------------------------------------
def init_resnet18_params(key):
    keys = iter(jax.random.split(key, 64))

    def conv(cout, cin, k):
        fan_in = cin * k * k
        return (jax.random.normal(next(keys), (cout, cin, k, k), jnp.float32)
                * (2.0 / fan_in) ** 0.5)

    def bn(c):
        # (gamma, beta, running_mean, running_var) -- inference-mode statistics.
        return (jnp.ones((c,), jnp.float32), jnp.zeros((c,), jnp.float32),
                jnp.zeros((c,), jnp.float32), jnp.ones((c,), jnp.float32))

    params = {"conv1_w": conv(64, 3, 7), "bn1": bn(64), "layers": []}
    cin = 64
    for cout, stride in ((64, 1), (128, 2), (256, 2), (512, 2)):
        blocks = []
        for b in range(2):
            s = stride if b == 0 else 1
            c_in_blk = cin if b == 0 else cout
            blk = {"conv1_w": conv(cout, c_in_blk, 3), "bn1": bn(cout),
                   "conv2_w": conv(cout, cout, 3), "bn2": bn(cout)}
            if s != 1 or c_in_blk != cout:
                blk["down_w"] = conv(cout, c_in_blk, 1)
                blk["bn_d"] = bn(cout)
            blocks.append(blk)
        params["layers"].append((blocks, stride))
        cin = cout
    kw_, kb_ = jax.random.split(next(keys))
    bound = 1.0 / (512 ** 0.5)
    params["fc_w"] = jax.random.uniform(kw_, (10, 512), jnp.float32, -bound, bound)
    params["fc_b"] = jax.random.uniform(kb_, (10,), jnp.float32, -bound, bound)
    return params


if __name__ == "__main__":
    key = jax.random.PRNGKey(0)
    kp, kx = jax.random.split(key)
    params = init_resnet18_params(kp)

    # CIFAR-10-like input: (B=2, C=3, H=32, W=32), NCHW as in PyTorch.
    x = jax.random.normal(kx, (2, 3, 32, 32), dtype=jnp.float32)

    logits = cifar10_resnet_forward(x, params)
    logits = jax.block_until_ready(logits)
    assert logits.shape == (2, 10)
    assert bool(jnp.all(jnp.isfinite(logits)))

    # Cross-check against a plain-XLA forward using the same bf16/f32 casting.
    ref = jax.block_until_ready(reference_forward(x, params))
    err = float(jnp.max(jnp.abs(logits - ref)))
    tol = 5e-2 * (float(jnp.max(jnp.abs(ref))) + 1.0)
    assert err <= tol, f"kernel/ref mismatch: max abs err {err} > tol {tol}"

    print("KERNEL_OK")
</pallas_src>

<mosaic_0001>
module attributes {stable_mosaic.version = 11 : i64} {
  func.func @_mm_bn_act_kernel(%arg0: i32, %arg1: i32, %arg2: i32, %arg3: memref<256x256xbf16, #tpu.memory_space<vmem>>, %arg4: memref<256x128xbf16, #tpu.memory_space<vmem>>, %arg5: memref<1x128xf32, #tpu.memory_space<vmem>>, %arg6: memref<1x128xf32, #tpu.memory_space<vmem>>, %arg7: memref<256x128xbf16, #tpu.memory_space<vmem>>, %arg8: memref<256x128xf32, #tpu.memory_space<vmem>>) attributes {dimension_semantics = [#tpu.dimension_semantics<parallel>, #tpu.dimension_semantics<parallel>, #tpu.dimension_semantics<arbitrary>], iteration_bounds = array<i64: 98, 1, 1>, scalar_prefetch = 0 : i64, scratch_operands = 1 : i64, tpu.core_type = #tpu.core_type<tc>, window_params = [{transform_indices = @transform_0, window_bounds = array<i64: 256, 256>}, {transform_indices = @transform_1, window_bounds = array<i64: 256, 128>}, {transform_indices = @transform_2, window_bounds = array<i64: 1, 128>}, {transform_indices = @transform_3, window_bounds = array<i64: 1, 128>}, {transform_indices = @transform_4, window_bounds = array<i64: 256, 128>}]} {
    %c0_i32 = arith.constant 0 : i32
    %0 = arith.cmpi eq, %arg2, %c0_i32 : i32
    %1 = arith.extui %0 : i1 to i32
    %c0_i32_0 = arith.constant 0 : i32
    %2 = arith.cmpi ne, %1, %c0_i32_0 : i32
    scf.if %2 {
      %cst_10 = arith.constant 0.000000e+00 : f32
      %12 = vector.broadcast %cst_10 : f32 to vector<256x128xf32>
      %c0_11 = arith.constant 0 : index
      %c0_12 = arith.constant 0 : index
      %13 = vector.load %arg8[%c0_11, %c0_12] : memref<256x128xf32, #tpu.memory_space<vmem>>, vector<256x128xf32>
      tpu.vector_store %arg8[%c0_11, %c0_12], %12 {strides = array<i32>} : memref<256x128xf32, #tpu.memory_space<vmem>>, vector<256x128xf32>,
    } else {
    }
    %c0 = arith.constant 0 : index
    %c0_1 = arith.constant 0 : index
    %3 = vector.load %arg8[%c0, %c0_1] : memref<256x128xf32, #tpu.memory_space<vmem>>, vector<256x128xf32>
    %c0_2 = arith.constant 0 : index
    %c0_3 = arith.constant 0 : index
    %4 = vector.load %arg3[%c0_2, %c0_3] : memref<256x256xbf16, #tpu.memory_space<vmem>>, vector<256x256xbf16>
    %c0_4 = arith.constant 0 : index
    %c0_5 = arith.constant 0 : index
    %5 = vector.load %arg4[%c0_4, %c0_5] : memref<256x128xbf16, #tpu.memory_space<vmem>>, vector<256x128xbf16>
    %cst = arith.constant dense<0.000000e+00> : vector<256x128xf32>
    %6 = tpu.matmul %4, %5, %cst {dimension_numbers = #tpu.dot_dimension_numbers<[1], [0], [0], [1], [0, 0, 1, 1], [], []>} : vector<256x256xbf16>, vector<256x128xbf16>, vector<256x128xf32> -> vector<256x128xf32>
    %7 = arith.addf %3, %6 : vector<256x128xf32>
    %c0_6 = arith.constant 0 : index
    %c0_7 = arith.constant 0 : index
    %8 = vector.load %arg8[%c0_6, %c0_7] : memref<256x128xf32, #tpu.memory_space<vmem>>, vector<256x128xf32>
    tpu.vector_store %arg8[%c0_6, %c0_7], %7 {strides = array<i32>} : memref<256x128xf32, #tpu.memory_space<vmem>>, vector<256x128xf32>,
    %c0_i32_8 = arith.constant 0 : i32
    %9 = arith.cmpi eq, %arg2, %c0_i32_8 : i32
    %10 = arith.extui %9 : i1 to i32
    %c0_i32_9 = arith.constant 0 : i32
    %11 = arith.cmpi ne, %10, %c0_i32_9 : i32
    scf.if %11 {
      %c0_10 = arith.constant 0 : index
      %c0_11 = arith.constant 0 : index
      %12 = vector.load %arg8[%c0_10, %c0_11] : memref<256x128xf32, #tpu.memory_space<vmem>>, vector<256x128xf32>
      %c0_12 = arith.constant 0 : index
      %c0_13 = arith.constant 0 : index
      %13 = vector.load %arg5[%c0_12, %c0_13] : memref<1x128xf32, #tpu.memory_space<vmem>>, vector<1x128xf32>
      %14 = vector.broadcast %13 : vector<1x128xf32> to vector<256x128xf32>
      %15 = arith.mulf %12, %14 : vector<256x128xf32>
      %c0_14 = arith.constant 0 : index
      %c0_15 = arith.constant 0 : index
      %16 = vector.load %arg6[%c0_14, %c0_15] : memref<1x128xf32, #tpu.memory_space<vmem>>, vector<1x128xf32>
      %17 = vector.broadcast %16 : vector<1x128xf32> to vector<256x128xf32>
      %18 = arith.addf %15, %17 : vector<256x128xf32>
      %cst_16 = arith.constant 0.000000e+00 : f32
      %19 = vector.broadcast %cst_16 : f32 to vector<256x128xf32>
      %20 = arith.maximumf %18, %19 : vector<256x128xf32>
      %21 = arith.truncf %20 : vector<256x128xf32> to vector<256x128xbf16>
      %c0_17 = arith.constant 0 : index
      %c0_18 = arith.constant 0 : index
      %22 = vector.load %arg7[%c0_17, %c0_18] : memref<256x128xbf16, #tpu.memory_space<vmem>>, vector<256x128xbf16>
      tpu.vector_store %arg7[%c0_17, %c0_18], %21 {strides = array<i32>} : memref<256x128xbf16, #tpu.memory_space<vmem>>, vector<256x128xbf16>,
    } else {
    }
    return
  }
  func.func @transform_0(%arg0: i32, %arg1: i32, %arg2: i32) -> (i32, i32) {
    %c0_i32 = arith.constant 0 : i32
    return %arg0, %arg2 : i32, i32
  }
  func.func @transform_1(%arg0: i32, %arg1: i32, %arg2: i32) -> (i32, i32) {
    %c0_i32 = arith.constant 0 : i32
    return %arg2, %arg1 : i32, i32
  }
  func.func @transform_2(%arg0: i32, %arg1: i32, %arg2: i32) -> (i32, i32) {
    %c0_i32 = arith.constant 0 : i32
    %c0_i32_0 = arith.constant 0 : i32
    return %c0_i32, %arg1 : i32, i32
  }
  func.func @transform_3(%arg0: i32, %arg1: i32, %arg2: i32) -> (i32, i32) {
    %c0_i32 = arith.constant 0 : i32
    %c0_i32_0 = arith.constant 0 : i32
    return %c0_i32, %arg1 : i32, i32
  }
  func.func @transform_4(%arg0: i32, %arg1: i32, %arg2: i32) -> (i32, i32) {
    %c0_i32 = arith.constant 0 : i32
    return %arg0, %arg1 : i32, i32
  }
}

</mosaic_0001>

<bundles_post_ra>
// kernel: tpu_custom_call.1
= control target key start
LH: loop header
LB: loop body
LE: loop exit
PB: predicated region body
PF: predicated region fallthrough
CT: control target
= control target key end

     0   :  { %9 = vsyncpa [#allocation4], 0  ;;  %s2448_s0 = inlined_call_operand.hbm [shape: bf16[25088,256], index: 0, kind: input, shape index: {}]   ;;  %s2449_s1 = inlined_call_operand.hbm [shape: bf16[256,128], index: 1, kind: input, shape index: {}]   ;;  %s2450_s2 = inlined_call_operand.hbm [shape: f32[1,128], index: 2, kind: input, shape index: {}]   ;;  %s2451_s3 = inlined_call_operand.hbm [shape: f32[1,128], index: 3, kind: input, shape index: {}]   ;;  %s2452_s4 = inlined_call_operand.hbm [shape: bf16[25088,128], index: 4, kind: output, shape index: {}]  }
   0x1   :  { %11 = vsyncpa [#allocation4 + $0x1], 0 }
   0x2   :  { %12 = vsyncpa [#allocation7], 0 }
   0x3   :  { %13 = vsyncpa [#allocation10], 0 }
   0x4   :  { %14 = vsyncpa [#allocation5], 0 }
   0x5   :  { %16 = vsyncpa [#allocation5 + $0x1], 0  ;;  %s2128_s15 = smov 0   ;;  %s2130_s16 = smov 0  }
   0x6   :  { %s2132_s17 = smov 0   ;;  %s2134_s18 = smov 0  }
   0x7   :  { %s2136_s19 = smov 0   ;;  %s2138_s20 = smov 0  }
   0x8 LB: > { %s1371_s21 = sadd.s32 4294967295, %s2090_s20   ;;  %s1372_s22 = sadd.s32 4294967294, %s2090_s20   ;;  %s2090_s20 = sphi %s2138_s20, %s22_s20   ;;  %s2086_s19 = sphi %s2136_s19, %s2471_s19   ;;  %s2082_s18 = sphi %s2134_s18, %s2470_s18   ;;  %s2078_s17 = sphi %s2132_s17, %s2469_s17   ;;  %s2074_s16 = sphi %s2130_s16, %s2468_s16   ;;  %s2070_s15 = sphi %s2128_s15, %s2467_s15  }
   0x9   : > { %p63_p0 = scmp.ne.s32.totalorder %s2074_s16, %s2070_s15  ;;  %p2162_p1 = scmp.eq.s32.totalorder %s1371_s21, 0 }
   0xa   : > { %p2166_p2 = scmp.eq.s32.totalorder %s1371_s21, 97  ;;  %p175_p3 = scmp.eq.s32.totalorder %s1372_s22, 97 }
   0xb   : > { %s2456_s23 = scalar_select %p2162_p1, 1, 0 }
   0xc   : > { %p2172_p4 = por %p2162_p1, %p63_p0  ;;  %p1373_p5 = scmp.ge.s32.totalorder %s2090_s20, 1 }
   0xd   : > { %p2177_p6 = por %p175_p3, %p63_p0  ;;  %p182_p7 = scmp.lt.s32.totalorder %s2090_s20, 99 }
   0xe   : > { %s2458_s25 = scalar_select %p2172_p4, 1, 0 }
   0xf   : > { %s2459_s26 = scalar_select %p2177_p6, 1, 0 }
  0x10   : > { %p2182_p8 = pnand %p1373_p5, %p182_p7  ;;  %s2092_s28 = smov [#allocation6]  }
  0x11   : > { %s198_s29 = sshll.u32 %s2092_s28, 4  ;;  %s2093_s5 = smov [#allocation8]   ;;  %s199_s29 = int_to_ptr.vmem [resolvable:$true] %s198_s29 }
  0x12   : > { %p1749_p9 = pneg %p2182_p8  ;;  %s214_s6 = sshll.u32 %s2093_s5, 4  ;;  %s215_s6 = int_to_ptr.vmem [resolvable:$true] %s214_s6 }
  0x13   : > { %s2094_s7 = smov [#allocation9]   ;;  %s1907_s9 = scalar_lea.vmem %s199_s29, 2048 }
  0x14   : > { %p2190_p10 = pnand %p1749_p9, %p2162_p1  ;;  %s227_s8 = sshll.u32 %s2094_s7, 4  ;;  %s228_s8 = int_to_ptr.vmem [resolvable:$true] %s227_s8 }
  0x15   : > { %p1908_p12 = scmp.ne.s32.totalorder %s199_s29, %s1907_s9  ;;  %p1915_p3 = scmp.lt.s32.totalorder %s199_s29, %s199_s29 }
  0x16   : > { %p1898_p11 = pneg %p2190_p10  ;;  %p1916_p5 = scmp.lt.s32.totalorder %s1907_s9, %s1907_s9 }
  0x18   : > { %p1910_p13 = pnand %p1908_p12, %p1898_p11  ;;  %p1917_p7 = por %p1916_p5, %p1915_p3 }
  0x1a   : > { %p1911_p0 = pneg %p1910_p13 }
  0x1c   : > { %p1918_p9 = pnand %p1917_p7, %p1911_p0 }
  0x1e   : > { %1921 = shalt.err (!%p1918_p9)
}
  0x1f   : > { %s2095_s10 = smov 64   ;;  %s2096_s11 = smov 4  }
  0x20   : > { %1752 = dma.hbm_to_vmem [thread:$0]  (!%p2190_p10), %s2449_s1, 2048, %s199_s29, [#allocation7], %s2095_s10, %s2095_s10, %s2096_s11  }
  0x21   : > { %s1933_s14 = scalar_lea.vmem %s215_s6, 16  ;;  %s1940_s21 = scalar_lea.vmem %s215_s6, 32 }
  0x22   : > { %p1934_p6 = scmp.ne.s32.totalorder %s215_s6, %s1933_s14  ;;  %p1941_p1 = scmp.lt.s32.totalorder %s215_s6, %s215_s6 }
  0x23   : > { %p1942_p3 = scmp.lt.s32.totalorder %s1940_s21, %s1933_s14 }
  0x24   : > { %p1936_p12 = pnand %p1934_p6, %p1898_p11 }
  0x25   : > { %p1943_p0 = por %p1942_p3, %p1941_p1 }
  0x26   : > { %p1937_p13 = pneg %p1936_p12 }
  0x28   : > { %p1944_p5 = pnand %p1943_p0, %p1937_p13 }
  0x2a   : > { %1947 = shalt.err (!%p1944_p5)
}
  0x2b   : > { %1755 = dma.hbm_to_vmem [thread:$0]  (!%p2190_p10), %s2450_s2, 16, %s215_s6, [#allocation7]  }
  0x2c   : > { %s1959_s29 = scalar_lea.vmem %s228_s8, 16  ;;  %s1966_s5 = scalar_lea.vmem %s228_s8, 32 }
  0x2d   : > { %p1960_p7 = scmp.ne.s32.totalorder %s228_s8, %s1959_s29  ;;  %p1967_p12 = scmp.lt.s32.totalorder %s228_s8, %s228_s8 }
  0x2e   : > { %p1968_p4 = scmp.lt.s32.totalorder %s1966_s5, %s1959_s29 }
  0x2f   : > { %p1962_p6 = pnand %p1960_p7, %p1898_p11 }
  0x30   : > { %p1969_p1 = por %p1968_p4, %p1967_p12 }
  0x31   : > { %p1963_p9 = pneg %p1962_p6 }
  0x33   : > { %p1970_p13 = pnand %p1969_p1, %p1963_p9 }
  0x35   : > { %1973 = shalt.err (!%p1970_p13)
}
  0x36   : > { %1758 = dma.hbm_to_vmem [thread:$0]  (!%p2190_p10), %s2451_s3, 16, %s228_s8, [#allocation10]  }
  0x37   : > { %s50_s6 = sadd.s32 1, %s2078_s17  ;;  %s41_s10 = sadd.s32 1, %s2086_s19 }
  0x38   : > { %p57_p4 = scmp.ne.s32.totalorder %s2078_s17, %s2074_s16  ;;  %p43_p11 = scmp.ge.s32.totalorder %s41_s10, 98 }
  0x39   : > { %p58_p3 = scmp.eq.s32.totalorder %s2090_s20, 0  ;;  %p1770_p5 = scmp.lt.s32.totalorder %s2090_s20, 98 }
  0x3a   : > { %p2227_p0 = por %p2166_p2, %p57_p4  ;;  %s2473_s10 = smov (%p43_p11, %s41_s10), 0 }
  0x3b   : > { %p59_p7 = por %p58_p3, %p57_p4  ;;  %s238_s11 = sand.u32 1, %s2078_s17  }
  0x3c   : > { %s45_s12 = ssub.s32 %s2086_s19, %s2473_s10  ;;  %s1378_s8 = sshll.u32 %s238_s11, 8 }
  0x3d   : > { %p48_p6 = scmp.eq.s32.totalorder %s45_s12, 0  ;;  %s1476_s13 = sshll.u32 %s2086_s19, 12 }
  0x3e   : > { %s251_s24 = scalar_lea.hbm %s2448_s0, %s1476_s13  ;;  %s242_s28 = scalar_lea.vmem [#allocation3], %s1378_s8 }
  0x3f   : > { %s2239_s14 = scalar_select %p48_p6, %s2078_s17, %s50_s6  }
  0x40   : > { %s252_s29 = sshll.u32 %s242_s28, 4  ;;  %p2246_p2 = pnand %p1770_p5, %p59_p7  ;;  %s253_s29 = int_to_ptr.vmem [resolvable:$true] %s252_s29 }
  0x41   : > { %s239_s7 = scalar_lea.sflag [#allocation4], %s238_s11  ;;  %s1987_s9 = scalar_lea.vmem %s253_s29, 4096 }
  0x42   : > { %p1976_p10 = pneg %p2246_p2  ;;  %p1988_p9 = scmp.ne.s32.totalorder %s253_s29, %s1987_s9 }
  0x43   : > { %s2097_s6 = smov [#allocation3]  }
  0x44   : > { %p1990_p12 = pnand %p1988_p9, %p1976_p10  ;;  %s1992_s12 = sshll.u32 %s2097_s6, 4  ;;  %s1993_s12 = int_to_ptr.vmem [resolvable:$false] %s1992_s12 }
  0x45   : > { %s1994_s13 = scalar_lea.vmem %s1993_s12, 8192  ;;  %p1995_p13 = scmp.lt.s32.totalorder %s253_s29, %s1993_s12 }
  0x46   : > { %p1991_p1 = pneg %p1990_p12  ;;  %p1996_p4 = scmp.lt.s32.totalorder %s1994_s13, %s1987_s9 }
  0x48   : > { %p1997_p11 = por %p1996_p4, %p1995_p13 }
  0x4a   : > { %p1998_p3 = pnand %p1997_p11, %p1991_p1 }
  0x4c   : > { %2001 = shalt.err (!%p1998_p3)
}
  0x4d   : > { %s2098_s8 = smov 128   ;;  %s2099_s21 = smov 8  }
  0x4e   : > { %1762 = dma.hbm_to_vmem [thread:$0]  (!%p2246_p2), %s251_s24, 4096, %s253_s29, %s239_s7, %s2098_s8, %s2098_s8, %s2099_s21  }
  0x4f   : > { %264 = sbr.rel (%p2182_p8) target bundleno = 402 (0x192), region = 36  ;;  %s2257_s11 = sand.u32 (!%p2182_p8), 1, %s2074_s16  }
  0x50   : > { %s1383_s22 = sshll.u32 (!%p2182_p8), %s2257_s11, 8  ;;  %s267_s28 = scalar_lea.sflag (!%p2182_p8), [#allocation4], %s2257_s11 }
  0x51   : > { %s2261_s9 = scalar_lea.vmem (!%p2182_p8), [#allocation3], %s1383_s22  ;;  %p2464_p5 = scmp.ne.s32.totalorder (!%p2182_p8), %s2458_s25, 0 }
  0x54   : > { %2053 = dma.done.wait (%p2464_p5), %s267_s28, 4096  }
  0x55   : > { %2055 = vsyncadd (%p2464_p5), %s267_s28, 4294963200  ;;  %p2465_p7 = scmp.ne.s32.totalorder %s2456_s23, 0 }
  0x57   : > { %2057 = dma.done.wait (%p2465_p7), [#allocation7], 2064  }
  0x58   : > { %2059 = vsyncadd (%p2465_p7), [#allocation7], 4294965232 }
  0x59   : > { %2061 = dma.done.wait (%p2465_p7), [#allocation10], 16  }
  0x5a   : > { %2063 = vsyncadd (%p2465_p7), [#allocation10], 4294967280  ;;  %v1832_v0 = vld [vmem:[#allocation6 + $0x78] sm:$0xff]   ;;  %v1834_v2 = vld [vmem:[#allocation6 + $0x70] sm:$0xff]   ;;  %s1387_s23 = sshll.u32 %s2257_s11, 7  ;;  %s1509_s27 = sshll.u32 %s2082_s18, 11 }
  0x5b   : > { %v1833_v1 = vld [vmem:[#allocation6 + $0x38] sm:$0xff]   ;;  %1605 = vmatprep.subr.bf16.mxu0 %v1832_v0  ;;  %1717 = vmatprep.subr.bf16.mxu1 %v1832_v0  ;;  %v1835_v3 = vld [vmem:[#allocation6 + $0x30] sm:$0xff]   ;;  %v1836_v4 = vld [vmem:[#allocation6 + $0x68] sm:$0xff]   ;;  %s2322_s25 = scalar_lea.vmem [#allocation11], %s1387_s23  ;;  %s2397_s7 = scalar_lea.hbm %s2452_s4, %s1509_s27 }
  0x5c   : > { %1606 = vmatpush3.bf16.msra.mxu0 %v1833_v1  ;;  %1725 = vmatpush3.bf16.msra.mxu1 %v1833_v1  ;;  %v1837_v5 = vld [vmem:[#allocation6 + $0x28] sm:$0xff]   ;;  %v1838_v6 = vld [vmem:[#allocation6 + $0x60] sm:$0xff]   ;;  %v1840_v8 = vld [vmem:[#allocation6 + $0x58] sm:$0xff]   ;;  %s1245_s24 = sshll.u32 %s2322_s25, 4  ;;  %s1231_s18 = scalar_lea.sflag [#allocation5], %s2257_s11  ;;  %s2399_s24 = int_to_ptr.vmem [resolvable:$true] %s1245_s24 }
  0x5d   : > { %1607 = vmatprep.subr.bf16.mxu0 %v1834_v2  ;;  %1718 = vmatprep.subr.bf16.mxu1 %v1834_v2  ;;  %v1839_v7 = vld [vmem:[#allocation6 + $0x20] sm:$0xff]   ;;  %v1841_v9 = vld [vmem:[#allocation6 + $0x18] sm:$0xff]   ;;  %v1842_v10 = vld [vmem:[#allocation6 + $0x50] sm:$0xff]   ;;  %s2002_s6 = scalar_lea.vmem %s2399_s24, 2048  ;;  %s2100_s12 = smov [#allocation11]  }
  0x5e   : > { %v1850_v11 = vld [vmem:[%s2261_s9 + $0x4] ss:$8 sps:$4 sm:$0xff]   ;;  %v1843_v13 = vld [vmem:[#allocation6 + $0x10] sm:$0xff]   ;;  %v1848_v18 = vld [vmem:[%s2261_s9] ss:$8 sps:$4 sm:$0xff]   ;;  %p2003_p8 = scmp.ne.s32.totalorder %s2399_s24, %s2002_s6  ;;  %s2006_s13 = sshll.u32 %s2100_s12, 4  ;;  %s2007_s13 = int_to_ptr.vmem [resolvable:$false] %s2006_s13 }
  0x5f   : > { %v1853_v12 = vld [vmem:[%s2261_s9 + $0x84] ss:$8 sps:$4 sm:$0xff]   ;;  %732 = vmatprep.mubr.bf16.mxu0 %v1850_v11  ;;  %v1851_v19 = vld [vmem:[%s2261_s9 + $0x80] ss:$8 sps:$4 sm:$0xff]   ;;  %v1854_v20 = vld [vmem:[%s2261_s9 + $0x14] ss:$8 sps:$4 sm:$0xff]   ;;  %p2009_p10 = scmp.lt.s32.totalorder %s2399_s24, %s2007_s13 }
  0x60   : > { %1608 = vmatpush3.bf16.msra.mxu0 %v1835_v3  ;;  %1726 = vmatpush3.bf16.msra.mxu1 %v1835_v3  ;;  %v1844_v14 = vld [vmem:[#allocation6 + $0x48] sm:$0xff]   ;;  %v1846_v16 = vld [vmem:[#allocation6 + $0x40] sm:$0xff]   ;;  %v1856_v21 = vld [vmem:[%s2261_s9 + $0x94] ss:$8 sps:$4 sm:$0xff]   ;;  %p2004_p6 = pnand %p2003_p8, %p2227_p0  ;;  %s2008_s8 = scalar_lea.vmem %s2007_s13, 4096 }
  0x61   : > { %1609 = vmatprep.subr.bf16.mxu0 %v1836_v4  ;;  %1719 = vmatprep.subr.bf16.mxu1 %v1836_v4  ;;  %v1845_v15 = vld [vmem:[#allocation6 + $0x8] sm:$0xff]   ;;  %v1847_v17 = vld [vmem:[#allocation6] sm:$0xff]   ;;  %v1858_v22 = vld [vmem:[%s2261_s9 + $0x10] ss:$8 sps:$4 sm:$0xff]   ;;  %p2010_p9 = scmp.lt.s32.totalorder %s2008_s8, %s2002_s6 }
  0x62   : > { %796 = vmatprep.mubr.bf16.mxu1 %v1853_v12  ;;  %v1859_v23 = vld [vmem:[%s2261_s9 + $0x90] ss:$8 sps:$4 sm:$0xff]   ;;  %v1860_v24 = vld [vmem:[%s2261_s9 + $0x24] ss:$8 sps:$4 sm:$0xff]   ;;  %v1864_v26 = vld [vmem:[%s2261_s9 + $0x20] ss:$8 sps:$4 sm:$0xff]   ;;  %p2005_p2 = pneg %p2004_p6 }
  0x63   : > { %v1862_v25 = vld [vmem:[%s2261_s9 + $0xa4] ss:$8 sps:$4 sm:$0xff]   ;;  %v1865_v27 = vld [vmem:[%s2261_s9 + $0xa0] ss:$8 sps:$4 sm:$0xff]   ;;  %v1866_v28 = vld [vmem:[%s2261_s9 + $0x34] ss:$8 sps:$4 sm:$0xff]   ;;  %p2011_p12 = por %p2010_p9, %p2009_p10 }
  0x64   : > { %1610 = vmatpush3.bf16.msra.mxu0 %v1837_v5  ;;  %1727 = vmatpush3.bf16.msra.mxu1 %v1837_v5  ;;  %v1868_v29 = vld [vmem:[%s2261_s9 + $0xb4] ss:$8 sps:$4 sm:$0xff]   ;;  %v1870_v30 = vld [vmem:[%s2261_s9 + $0x30] ss:$8 sps:$4 sm:$0xff]   ;;  %v1872_v32 = vld [vmem:[%s2261_s9 + $0x44] ss:$8 sps:$4 sm:$0xff]  }
  0x65   : > { %1611 = vmatprep.subr.bf16.mxu0 %v1838_v6  ;;  %1720 = vmatprep.subr.bf16.mxu1 %v1838_v6  ;;  %v1871_v31 = vld [vmem:[%s2261_s9 + $0xb0] ss:$8 sps:$4 sm:$0xff]   ;;  %v1874_v33 = vld [vmem:[%s2261_s9 + $0xc4] ss:$8 sps:$4 sm:$0xff]   ;;  %v1876_v34 = vld [vmem:[%s2261_s9 + $0x40] ss:$8 sps:$4 sm:$0xff]   ;;  %p2012_p1 = pnand %p2011_p12, %p2005_p2 }
  0x66   : > { %v1877_v35 = vld [vmem:[%s2261_s9 + $0xc0] ss:$8 sps:$4 sm:$0xff]   ;;  %v1878_v36 = vld [vmem:[%s2261_s9 + $0x54] ss:$8 sps:$4 sm:$0xff]   ;;  %v1882_v38 = vld [vmem:[%s2261_s9 + $0x50] ss:$8 sps:$4 sm:$0xff]  }
  0x67   : > { %v1880_v37 = vld [vmem:[%s2261_s9 + $0xd4] ss:$8 sps:$4 sm:$0xff]   ;;  %v1883_v39 = vld [vmem:[%s2261_s9 + $0xd0] ss:$8 sps:$4 sm:$0xff]   ;;  %v1884_v40 = vld [vmem:[%s2261_s9 + $0x64] ss:$8 sps:$4 sm:$0xff]  }
  0x68   : > { %1612 = vmatpush3.bf16.msra.mxu0 %v1839_v7  ;;  %1728 = vmatpush3.bf16.msra.mxu1 %v1839_v7  ;;  %v1886_v41 = vld [vmem:[%s2261_s9 + $0xe4] ss:$8 sps:$4 sm:$0xff]   ;;  %v1888_v42 = vld [vmem:[%s2261_s9 + $0x60] ss:$8 sps:$4 sm:$0xff]   ;;  %v1890_v44 = vld [vmem:[%s2261_s9 + $0x74] ss:$8 sps:$4 sm:$0xff]  }
  0x69   : > { %1613 = vmatprep.subr.bf16.mxu0 %v1840_v8  ;;  %1721 = vmatprep.subr.bf16.mxu1 %v1840_v8  ;;  %v1889_v43 = vld [vmem:[%s2261_s9 + $0xe0] ss:$8 sps:$4 sm:$0xff]   ;;  %v1892_v45 = vld [vmem:[%s2261_s9 + $0xf4] ss:$8 sps:$4 sm:$0xff]   ;;  %v1894_v46 = vld [vmem:[%s2261_s9 + $0x70] ss:$8 sps:$4 sm:$0xff]  }
  0x6a   : > { %v1895_v47 = vld [vmem:[%s2261_s9 + $0xf0] ss:$8 sps:$4 sm:$0xff]   ;;  %v2307_v51 = vld [vmem:[#allocation8] ss:$0 sm:$0xff]  ;;  %v2311_v59 = vld [vmem:[#allocation9] ss:$0 sm:$0xff] }
  0x6c   : > { %1614 = vmatpush3.bf16.msra.mxu0 %v1841_v9  ;;  %1729 = vmatpush3.bf16.msra.mxu1 %v1841_v9 }
  0x6d   : > { %1615 = vmatprep.subr.bf16.mxu0 %v1842_v10  ;;  %1722 = vmatprep.subr.bf16.mxu1 %v1842_v10 }
  0x70   : > { %1616 = vmatpush3.bf16.msra.mxu0 %v1843_v13  ;;  %1730 = vmatpush3.bf16.msra.mxu1 %v1843_v13 }
  0x71   : > { %1617 = vmatprep.subr.bf16.mxu0 %v1844_v14  ;;  %1723 = vmatprep.subr.bf16.mxu1 %v1844_v14 }
  0x74   : > { %1618 = vmatpush3.bf16.msra.mxu0 %v1845_v15  ;;  %1731 = vmatpush3.bf16.msra.mxu1 %v1845_v15 }
  0x75   : > { %1619 = vmatprep.subr.bf16.mxu0 %v1846_v16  ;;  %1724 = vmatprep.subr.bf16.mxu1 %v1846_v16 }
  0x78   : > { %1620 = vmatpush3.bf16.msra.mxu0 %v1847_v17  ;;  %1732 = vmatpush3.bf16.msra.mxu1 %v1847_v17 }
  0x7b   : > { %733 = vmatmul.mubr.bf16.vlgmr.msra.gmra.mxu0 %v1848_v18  ;;  %797 = vmatmul.mubr.bf16.vlgmr.msra.gmra.mxu1 %v1851_v19 }
  0x7c   : > { %740 = vmatprep.mubr.bf16.mxu0 %v1854_v20  ;;  %804 = vmatprep.mubr.bf16.mxu1 %v1856_v21 }
  0x83   : > { %741 = vmatmul.mubr.bf16.gmra.mxu0 %v1858_v22  ;;  %805 = vmatmul.mubr.bf16.gmra.mxu1 %v1859_v23 }
  0x84   : > { %748 = vmatprep.mubr.bf16.mxu0 %v1860_v24  ;;  %812 = vmatprep.mubr.bf16.mxu1 %v1862_v25 }
  0x8b   : > { %749 = vmatmul.mubr.bf16.gmra.mxu0 %v1864_v26  ;;  %813 = vmatmul.mubr.bf16.gmra.mxu1 %v1865_v27 }
  0x8c   : > { %756 = vmatprep.mubr.bf16.mxu0 %v1866_v28  ;;  %820 = vmatprep.mubr.bf16.mxu1 %v1868_v29 }
  0x93   : > { %757 = vmatmul.mubr.bf16.gmra.mxu0 %v1870_v30  ;;  %821 = vmatmul.mubr.bf16.gmra.mxu1 %v1871_v31 }
  0x94   : > { %764 = vmatprep.mubr.bf16.mxu0 %v1872_v32  ;;  %828 = vmatprep.mubr.bf16.mxu1 %v1874_v33 }
  0x9b   : > { %765 = vmatmul.mubr.bf16.gmra.mxu0 %v1876_v34  ;;  %829 = vmatmul.mubr.bf16.gmra.mxu1 %v1877_v35 }
  0x9c   : > { %772 = vmatprep.mubr.bf16.mxu0 %v1878_v36  ;;  %836 = vmatprep.mubr.bf16.mxu1 %v1880_v37 }
  0xa3   : > { %773 = vmatmul.mubr.bf16.gmra.mxu0 %v1882_v38  ;;  %837 = vmatmul.mubr.bf16.gmra.mxu1 %v1883_v39 }
  0xa4   : > { %780 = vmatprep.mubr.bf16.mxu0 %v1884_v40  ;;  %844 = vmatprep.mubr.bf16.mxu1 %v1886_v41 }
  0xab   : > { %781 = vmatmul.mubr.bf16.gmra.mxu0 %v1888_v42  ;;  %845 = vmatmul.mubr.bf16.gmra.mxu1 %v1889_v43 }
  0xac   : > { %788 = vmatprep.mubr.bf16.mxu0 %v1890_v44  ;;  %852 = vmatprep.mubr.bf16.mxu1 %v1892_v45 }
  0xb3   : > { %789 = vmatmul.mubr.bf16.gmra.mxu0 %v1894_v46  ;;  %853 = vmatmul.mubr.bf16.gmra.mxu1 %v1895_v47 }
 0x13b   : > { %v1621_v48 = vpop.f32.mrf.mxu0  ;;  %v1669_v49 = vpop.f32.mrf.mxu1 }
 0x13d   : > { %v1622_v50 = vpop.f32.mrf.mxu0  ;;  %v1670_v52 = vpop.f32.mrf.mxu1 }
 0x13e   : > { %v1623_v53 = vadd.f32 %v1622_v50, %v1621_v48  ;;  %v1671_v54 = vadd.f32 %v1670_v52, %v1669_v49 }
 0x13f   : > { %v1624_v55 = vpop.f32.mrf.mxu0  ;;  %v1672_v56 = vpop.f32.mrf.mxu1 }
 0x140   : > { %v967_v57 = vmul.f32 %v1623_v53, %v2307_v51  ;;  %v983_v58 = vmul.f32 %v1671_v54, %v2307_v51 }
 0x141   : > { %v1625_v60 = vpop.f32.mrf.mxu0  ;;  %v1673_v61 = vpop.f32.mrf.mxu1 }
 0x142   : > { %v1626_v62 = vadd.f32 %v1625_v60, %v1624_v55  ;;  %v1674_v63 = vadd.f32 %v1673_v61, %v1672_v56  ;;  %v1006_v2 = vadd.f32 %v2311_v59, %v967_v57  ;;  %v1022_v3 = vadd.f32 %v2311_v59, %v983_v58 }
 0x143   : > { %v1627_v0 = vpop.f32.mrf.mxu0  ;;  %v1675_v1 = vpop.f32.mrf.mxu1 }
 0x144   : > { %v968_v4 = vmul.f32 %v1626_v62, %v2307_v51  ;;  %v984_v5 = vmul.f32 %v1674_v63, %v2307_v51  ;;  %v1038_v14 = vmax.f32 %v1006_v2, 0.0  ;;  %v1054_v15 = vmax.f32 %v1022_v3, 0.0 }
 0x145   : > { %v1628_v6 = vpop.f32.mrf.mxu0  ;;  %v1676_v7 = vpop.f32.mrf.mxu1 }
 0x146   : > { %v1007_v8 = vadd.f32 %v2311_v59, %v968_v4  ;;  %v1023_v9 = vadd.f32 %v2311_v59, %v984_v5  ;;  %v1629_v10 = vadd.f32 %v1628_v6, %v1627_v0  ;;  %v1677_v11 = vadd.f32 %v1676_v7, %v1675_v1 }
 0x147   : > { %v1630_v12 = vpop.f32.mrf.mxu0  ;;  %v1678_v13 = vpop.f32.mrf.mxu1 }
 0x148   : > { %v1039_v16 = vmax.f32 %v1007_v8, 0.0  ;;  %v1055_v17 = vmax.f32 %v1023_v9, 0.0  ;;  %v969_v18 = vmul.f32 %v1629_v10, %v2307_v51  ;;  %v985_v19 = vmul.f32 %v1677_v11, %v2307_v51 }
 0x149   : > { %v1631_v20 = vpop.f32.mrf.mxu0  ;;  %v1679_v21 = vpop.f32.mrf.mxu1 }
 0x14a   : > { %v1513_v22 = vpack.c.bf16 %v1039_v16, %v1038_v14  ;;  %v1553_v23 = vpack.c.bf16 %v1055_v17, %v1054_v15  ;;  %v1632_v24 = vadd.f32 %v1631_v20, %v1630_v12  ;;  %v1680_v25 = vadd.f32 %v1679_v21, %v1678_v13 }
 0x14b   : > { %v1633_v26 = vpop.f32.mrf.mxu0  ;;  %v1681_v27 = vpop.f32.mrf.mxu1  ;;  %v1008_v28 = vadd.f32 %v2311_v59, %v969_v18  ;;  %v1024_v29 = vadd.f32 %v2311_v59, %v985_v19 }
 0x14c   : > { %1514 = vst [vmem:[%s2322_s25] sm:$0xff] %v1513_v22   ;;  %1597 = vst [vmem:[%s2322_s25 + $0x40] sm:$0xff] %v1553_v23   ;;  %v970_v30 = vmul.f32 %v1632_v24, %v2307_v51  ;;  %v986_v31 = vmul.f32 %v1680_v25, %v2307_v51 }
 0x14d   : > { %v1634_v32 = vpop.f32.mrf.mxu0  ;;  %v1682_v33 = vpop.f32.mrf.mxu1  ;;  %v1040_v42 = vmax.f32 %v1008_v28, 0.0  ;;  %v1056_v43 = vmax.f32 %v1024_v29, 0.0 }
 0x14e   : > { %v1635_v34 = vadd.f32 %v1634_v32, %v1633_v26  ;;  %v1683_v35 = vadd.f32 %v1682_v33, %v1681_v27  ;;  %v1009_v36 = vadd.f32 %v2311_v59, %v970_v30  ;;  %v1025_v37 = vadd.f32 %v2311_v59, %v986_v31 }
 0x14f   : > { %v1636_v38 = vpop.f32.mrf.mxu0  ;;  %v1684_v39 = vpop.f32.mrf.mxu1 }
 0x150   : > { %v971_v40 = vmul.f32 %v1635_v34, %v2307_v51  ;;  %v987_v41 = vmul.f32 %v1683_v35, %v2307_v51  ;;  %v1041_v44 = vmax.f32 %v1009_v36, 0.0  ;;  %v1057_v45 = vmax.f32 %v1025_v37, 0.0 }
 0x151   : > { %v1637_v46 = vpop.f32.mrf.mxu0  ;;  %v1685_v47 = vpop.f32.mrf.mxu1 }
 0x152   : > { %v1638_v48 = vadd.f32 %v1637_v46, %v1636_v38  ;;  %v1686_v49 = vadd.f32 %v1685_v47, %v1684_v39  ;;  %v1518_v50 = vpack.c.bf16 %v1041_v44, %v1040_v42  ;;  %v1558_v52 = vpack.c.bf16 %v1057_v45, %v1056_v43 }
 0x153   : > { %v1639_v53 = vpop.f32.mrf.mxu0  ;;  %v1687_v54 = vpop.f32.mrf.mxu1  ;;  %v1010_v55 = vadd.f32 %v2311_v59, %v971_v40  ;;  %v1026_v56 = vadd.f32 %v2311_v59, %v987_v41 }
 0x154   : > { %v972_v57 = vmul.f32 %v1638_v48, %v2307_v51  ;;  %v988_v58 = vmul.f32 %v1686_v49, %v2307_v51  ;;  %1590 = vst [vmem:[%s2322_s25 + $0x8] sm:$0xff] %v1518_v50   ;;  %1598 = vst [vmem:[%s2322_s25 + $0x48] sm:$0xff] %v1558_v52  }
 0x155   : > { %v1640_v60 = vpop.f32.mrf.mxu0  ;;  %v1688_v61 = vpop.f32.mrf.mxu1  ;;  %v1042_v4 = vmax.f32 %v1010_v55, 0.0  ;;  %v1058_v5 = vmax.f32 %v1026_v56, 0.0 }
 0x156   : > { %v1011_v62 = vadd.f32 %v2311_v59, %v972_v57  ;;  %v1027_v63 = vadd.f32 %v2311_v59, %v988_v58  ;;  %v1641_v0 = vadd.f32 %v1640_v60, %v1639_v53  ;;  %v1689_v1 = vadd.f32 %v1688_v61, %v1687_v54 }
 0x157   : > { %v1642_v2 = vpop.f32.mrf.mxu0  ;;  %v1690_v3 = vpop.f32.mrf.mxu1 }
 0x158   : > { %v1043_v6 = vmax.f32 %v1011_v62, 0.0  ;;  %v1059_v7 = vmax.f32 %v1027_v63, 0.0  ;;  %v973_v8 = vmul.f32 %v1641_v0, %v2307_v51  ;;  %v989_v9 = vmul.f32 %v1689_v1, %v2307_v51 }
 0x159   : > { %v1643_v10 = vpop.f32.mrf.mxu0  ;;  %v1691_v11 = vpop.f32.mrf.mxu1 }
 0x15a   : > { %v1523_v12 = vpack.c.bf16 %v1043_v6, %v1042_v4  ;;  %v1563_v13 = vpack.c.bf16 %v1059_v7, %v1058_v5  ;;  %v1644_v14 = vadd.f32 %v1643_v10, %v1642_v2  ;;  %v1692_v15 = vadd.f32 %v1691_v11, %v1690_v3 }
 0x15b   : > { %v1645_v16 = vpop.f32.mrf.mxu0  ;;  %v1693_v17 = vpop.f32.mrf.mxu1  ;;  %v1012_v18 = vadd.f32 %v2311_v59, %v973_v8  ;;  %v1028_v19 = vadd.f32 %v2311_v59, %v989_v9 }
 0x15c   : > { %1591 = vst [vmem:[%s2322_s25 + $0x10] sm:$0xff] %v1523_v12   ;;  %1599 = vst [vmem:[%s2322_s25 + $0x50] sm:$0xff] %v1563_v13   ;;  %v974_v20 = vmul.f32 %v1644_v14, %v2307_v51  ;;  %v990_v21 = vmul.f32 %v1692_v15, %v2307_v51 }
 0x15d   : > { %v1646_v22 = vpop.f32.mrf.mxu0  ;;  %v1694_v23 = vpop.f32.mrf.mxu1  ;;  %v1044_v32 = vmax.f32 %v1012_v18, 0.0  ;;  %v1060_v33 = vmax.f32 %v1028_v19, 0.0 }
 0x15e   : > { %v1647_v24 = vadd.f32 %v1646_v22, %v1645_v16  ;;  %v1695_v25 = vadd.f32 %v1694_v23, %v1693_v17  ;;  %v1013_v26 = vadd.f32 %v2311_v59, %v974_v20  ;;  %v1029_v27 = vadd.f32 %v2311_v59, %v990_v21 }
 0x15f   : > { %v1648_v28 = vpop.f32.mrf.mxu0  ;;  %v1696_v29 = vpop.f32.mrf.mxu1 }
 0x160   : > { %v975_v30 = vmul.f32 %v1647_v24, %v2307_v51  ;;  %v991_v31 = vmul.f32 %v1695_v25, %v2307_v51  ;;  %v1045_v34 = vmax.f32 %v1013_v26, 0.0  ;;  %v1061_v35 = vmax.f32 %v1029_v27, 0.0 }
 0x161   : > { %v1649_v36 = vpop.f32.mrf.mxu0  ;;  %v1697_v37 = vpop.f32.mrf.mxu1 }
 0x162   : > { %v1650_v38 = vadd.f32 %v1649_v36, %v1648_v28  ;;  %v1698_v39 = vadd.f32 %v1697_v37, %v1696_v29  ;;  %v1528_v40 = vpack.c.bf16 %v1045_v34, %v1044_v32  ;;  %v1568_v41 = vpack.c.bf16 %v1061_v35, %v1060_v33 }
 0x163   : > { %v1651_v42 = vpop.f32.mrf.mxu0  ;;  %v1699_v43 = vpop.f32.mrf.mxu1  ;;  %v1014_v44 = vadd.f32 %v2311_v59, %v975_v30  ;;  %v1030_v45 = vadd.f32 %v2311_v59, %v991_v31 }
 0x164   : > { %v976_v46 = vmul.f32 %v1650_v38, %v2307_v51  ;;  %v992_v47 = vmul.f32 %v1698_v39, %v2307_v51  ;;  %1592 = vst [vmem:[%s2322_s25 + $0x18] sm:$0xff] %v1528_v40   ;;  %1600 = vst [vmem:[%s2322_s25 + $0x58] sm:$0xff] %v1568_v41  }
 0x165   : > { %v1652_v48 = vpop.f32.mrf.mxu0  ;;  %v1700_v49 = vpop.f32.mrf.mxu1  ;;  %v1046_v57 = vmax.f32 %v1014_v44, 0.0  ;;  %v1062_v58 = vmax.f32 %v1030_v45, 0.0 }
 0x166   : > { %v1015_v50 = vadd.f32 %v2311_v59, %v976_v46  ;;  %v1031_v52 = vadd.f32 %v2311_v59, %v992_v47  ;;  %v1653_v53 = vadd.f32 %v1652_v48, %v1651_v42  ;;  %v1701_v54 = vadd.f32 %v1700_v49, %v1699_v43 }
 0x167   : > { %v1654_v55 = vpop.f32.mrf.mxu0  ;;  %v1702_v56 = vpop.f32.mrf.mxu1 }
 0x168   : > { %v1047_v60 = vmax.f32 %v1015_v50, 0.0  ;;  %v1063_v61 = vmax.f32 %v1031_v52, 0.0  ;;  %v977_v62 = vmul.f32 %v1653_v53, %v2307_v51  ;;  %v993_v63 = vmul.f32 %v1701_v54, %v2307_v51 }
 0x169   : > { %v1655_v0 = vpop.f32.mrf.mxu0  ;;  %v1703_v1 = vpop.f32.mrf.mxu1 }
 0x16a   : > { %v1533_v2 = vpack.c.bf16 %v1047_v60, %v1046_v57  ;;  %v1573_v3 = vpack.c.bf16 %v1063_v61, %v1062_v58  ;;  %v1656_v4 = vadd.f32 %v1655_v0, %v1654_v55  ;;  %v1704_v5 = vadd.f32 %v1703_v1, %v1702_v56 }
 0x16b   : > { %v1657_v6 = vpop.f32.mrf.mxu0  ;;  %v1705_v7 = vpop.f32.mrf.mxu1  ;;  %v1016_v8 = vadd.f32 %v2311_v59, %v977_v62  ;;  %v1032_v9 = vadd.f32 %v2311_v59, %v993_v63 }
 0x16c   : > { %1593 = vst [vmem:[%s2322_s25 + $0x20] sm:$0xff] %v1533_v2   ;;  %1601 = vst [vmem:[%s2322_s25 + $0x60] sm:$0xff] %v1573_v3   ;;  %v978_v10 = vmul.f32 %v1656_v4, %v2307_v51  ;;  %v994_v11 = vmul.f32 %v1704_v5, %v2307_v51 }
 0x16d   : > { %v1658_v12 = vpop.f32.mrf.mxu0  ;;  %v1706_v13 = vpop.f32.mrf.mxu1  ;;  %v1048_v22 = vmax.f32 %v1016_v8, 0.0  ;;  %v1064_v23 = vmax.f32 %v1032_v9, 0.0 }
 0x16e   : > { %v1659_v14 = vadd.f32 %v1658_v12, %v1657_v6  ;;  %v1707_v15 = vadd.f32 %v1706_v13, %v1705_v7  ;;  %v1017_v16 = vadd.f32 %v2311_v59, %v978_v10  ;;  %v1033_v17 = vadd.f32 %v2311_v59, %v994_v11 }
 0x16f   : > { %v1660_v18 = vpop.f32.mrf.mxu0  ;;  %v1708_v19 = vpop.f32.mrf.mxu1 }
 0x170   : > { %v979_v20 = vmul.f32 %v1659_v14, %v2307_v51  ;;  %v995_v21 = vmul.f32 %v1707_v15, %v2307_v51  ;;  %v1049_v24 = vmax.f32 %v1017_v16, 0.0  ;;  %v1065_v25 = vmax.f32 %v1033_v17, 0.0 }
 0x171   : > { %v1661_v26 = vpop.f32.mrf.mxu0  ;;  %v1709_v27 = vpop.f32.mrf.mxu1 }
 0x172   : > { %v1662_v28 = vadd.f32 %v1661_v26, %v1660_v18  ;;  %v1710_v29 = vadd.f32 %v1709_v27, %v1708_v19  ;;  %v1538_v30 = vpack.c.bf16 %v1049_v24, %v1048_v22  ;;  %v1578_v31 = vpack.c.bf16 %v1065_v25, %v1064_v23 }
 0x173   : > { %v1663_v32 = vpop.f32.mrf.mxu0  ;;  %v1711_v33 = vpop.f32.mrf.mxu1  ;;  %v1018_v34 = vadd.f32 %v2311_v59, %v979_v20  ;;  %v1034_v35 = vadd.f32 %v2311_v59, %v995_v21 }
 0x174   : > { %v980_v36 = vmul.f32 %v1662_v28, %v2307_v51  ;;  %v996_v37 = vmul.f32 %v1710_v29, %v2307_v51  ;;  %1594 = vst [vmem:[%s2322_s25 + $0x28] sm:$0xff] %v1538_v30   ;;  %1602 = vst [vmem:[%s2322_s25 + $0x68] sm:$0xff] %v1578_v31  }
 0x175   : > { %v1664_v38 = vpop.f32.mrf.mxu0  ;;  %v1712_v39 = vpop.f32.mrf.mxu1  ;;  %v1050_v46 = vmax.f32 %v1018_v34, 0.0  ;;  %v1066_v47 = vmax.f32 %v1034_v35, 0.0 }
 0x176   : > { %v1019_v40 = vadd.f32 %v2311_v59, %v980_v36  ;;  %v1035_v41 = vadd.f32 %v2311_v59, %v996_v37  ;;  %v1665_v42 = vadd.f32 %v1664_v38, %v1663_v32  ;;  %v1713_v43 = vadd.f32 %v1712_v39, %v1711_v33 }
 0x177   : > { %v1666_v44 = vpop.f32.mrf.mxu0  ;;  %v1714_v45 = vpop.f32.mrf.mxu1 }
 0x178   : > { %v1051_v48 = vmax.f32 %v1019_v40, 0.0  ;;  %v1067_v49 = vmax.f32 %v1035_v41, 0.0  ;;  %v981_v50 = vmul.f32 %v1665_v42, %v2307_v51  ;;  %v997_v52 = vmul.f32 %v1713_v43, %v2307_v51 }
 0x179   : > { %v1667_v53 = vpop.f32.mrf.mxu0  ;;  %v1715_v54 = vpop.f32.mrf.mxu1 }
 0x17a   : > { %v1543_v55 = vpack.c.bf16 %v1051_v48, %v1050_v46  ;;  %v1583_v56 = vpack.c.bf16 %v1067_v49, %v1066_v47  ;;  %v1668_v57 = vadd.f32 %v1667_v53, %v1666_v44  ;;  %v1716_v58 = vadd.f32 %v1715_v54, %v1714_v45 }
 0x17b   : > { %v1020_v60 = vadd.f32 %v2311_v59, %v981_v50  ;;  %v1036_v61 = vadd.f32 %v2311_v59, %v997_v52 }
 0x17c   : > { %1595 = vst [vmem:[%s2322_s25 + $0x30] sm:$0xff] %v1543_v55   ;;  %1603 = vst [vmem:[%s2322_s25 + $0x70] sm:$0xff] %v1583_v56   ;;  %v982_v62 = vmul.f32 %v1668_v57, %v2307_v51  ;;  %v998_v63 = vmul.f32 %v1716_v58, %v2307_v51 }
 0x17d   : > { %v1052_v2 = vmax.f32 %v1020_v60, 0.0  ;;  %v1068_v3 = vmax.f32 %v1036_v61, 0.0 }
 0x17e   : > { %v1021_v0 = vadd.f32 %v2311_v59, %v982_v62  ;;  %v1037_v1 = vadd.f32 %v2311_v59, %v998_v63 }
 0x180   : > { %v1053_v4 = vmax.f32 %v1021_v0, 0.0  ;;  %v1069_v5 = vmax.f32 %v1037_v1, 0.0 }
 0x182   : > { %v1548_v51 = vpack.c.bf16 %v1053_v4, %v1052_v2  ;;  %v1588_v6 = vpack.c.bf16 %v1069_v5, %v1068_v3 }
 0x184   : > { %1596 = vst [vmem:[%s2322_s25 + $0x38] sm:$0xff] %v1548_v51   ;;  %1604 = vst [vmem:[%s2322_s25 + $0x78] sm:$0xff] %v1588_v6  }
 0x185   : > { %2015 = shalt.err (!%p2012_p1)
}
 0x186   : > { %s2016_s21 = scalar_lea.hbm %s2397_s7, 2048  ;;  %s2020_s9 = scalar_lea.hbm %s2452_s4, 200704 }
 0x187   : > { %p2017_p13 = scmp.ne.s32.totalorder %s2397_s7, %s2016_s21  ;;  %p2021_p3 = scmp.lt.s32.totalorder %s2397_s7, %s2452_s4 }
 0x188   : > { %p2022_p5 = scmp.lt.s32.totalorder %s2020_s9, %s2016_s21 }
 0x189   : > { %p2018_p4 = pnand %p2017_p13, %p2227_p0 }
 0x18a   : > { %p2023_p7 = por %p2022_p5, %p2021_p3 }
 0x18b   : > { %p2019_p11 = pneg %p2018_p4 }
 0x18d   : > { %p2024_p8 = pnand %p2023_p7, %p2019_p11 }
 0x18f   : > { %2027 = shalt.err (!%p2024_p8)
}
 0x190   : > { %s2101_s27 = smov 64   ;;  %s2102_s29 = smov 4  }
 0x191   : > { %1747 = dma.vmem_to_hbm [thread:$0]  (%p2227_p0), %s2399_s24, 2048, %s2397_s7, %s1231_s18, %s2101_s27, %s2101_s27, %s2102_s29  }
 0x192 PF: > { %p1774_p6 = scmp.ge.s32.totalorder %s2090_s20, 2  ;;  %s1260_s5 = sand.u32 1, %s2070_s15  }
 0x193   : > { %p2466_p2 = scmp.ne.s32.totalorder %s2459_s26, 0  ;;  %s1261_s6 = scalar_lea.sflag [#allocation5], %s1260_s5 }
 0x195   : > { %p1764_p10 = pnand %p1774_p6, %p2466_p2 }
 0x197   : > { %p1765_p9 = pneg %p1764_p10 }
 0x199   : > { %2065 = dma.done.wait (%p1765_p9), %s1261_s6, 2048  }
 0x19a   : > { %2067 = vsyncadd (%p1765_p9), %s1261_s6, 4294965248  ;;  %s22_s20 = sadd.s32 1, %s2090_s20   ;;  %s2467_s15 = smov %s2074_s16 }
 0x19b   : > { %p19_p12 = scmp.ge.s32.totalorder %s22_s20, 100   ;;  %s2468_s16 = smov %s2078_s17 }
 0x19c   : > { %s2469_s17 = smov %s2239_s14  ;;  %s2470_s18 = smov %s2086_s19 }
 0x19d   : > { %s2471_s19 = smov %s2473_s10  ;;  %21 = sbr.rel (!%p19_p12) target bundleno = 8 (0x8), region = 104 }
 0x1a2   :  { %1266 = vsyncpa [#allocation4], 1 }
 0x1a3   :  { %1268 = vsyncpa [#allocation4 + $0x1], 1 }
 0x1a4   :  { %1269 = vsyncpa [#allocation7], 1 }
 0x1a5   :  { %1270 = vsyncpa [#allocation10], 1 }
 0x1a6   :  { %1271 = vsyncpa [#allocation5], 1 }
 0x1a7   :  { %1273 = vsyncpa [#allocation5 + $0x1], 1 }

</bundles_post_ra>
